<compile_context>
chip_gen: v7x
topology: tpu7x:2x2x1
jax: 0.10.0
libtpu: 0.0.40
codegen_flags: <defaults>
</compile_context>

<pallas_src>
import functools

import numpy as np
import jax
import jax.numpy as jnp
from jax import lax
from jax.experimental import pallas as pl
from jax.experimental.pallas import tpu as pltpu

N_BINS = 15
_LANES = 128
_TARGET_BLOCK_BYTES = 2 * 1024 * 1024   # real HBM bytes per logits block
_VMEM_INPUT_BUDGET = 8 * 1024 * 1024    # double-buffered input blocks (padded accounting)
_VMEM_LIMIT_BYTES = 32 * 1024 * 1024    # explicit scoped-VMEM limit (safe on v5e/v6e/v7x)
_MAX_TILE_N = 32768                     # bound on in-kernel temporaries


def _bin_edges(bidx, lowers, uppers):
    """Per-bin (lower, upper] edge vectors laid along `bidx`'s axis.

    Padding entries keep a 2.0 sentinel (conf <= 1 so they never match).
    Built from the exact same Python floats the reference uses, so boundary
    behavior matches the reference bit-for-bit.
    """
    lo = jnp.full(bidx.shape, 2.0, jnp.float32)
    up = jnp.full(bidx.shape, 2.0, jnp.float32)
    for b, (l, u) in enumerate(zip(lowers, uppers)):
        lo = jnp.where(bidx == b, jnp.float32(l), lo)
        up = jnp.where(bidx == b, jnp.float32(u), up)
    return lo, up


def _finalize(count, sconf, sacc, n_total, reduce_axis):
    """Combine per-bin partial stats into the scalar UE value."""
    prop = count / jnp.float32(n_total)
    safe = jnp.maximum(count, 1.0)
    avg_conf = sconf / safe
    avg_acc = sacc / safe
    contrib = avg_conf * jnp.maximum(avg_acc - avg_conf, 0.0) * prop
    contrib = jnp.where(count > 0.0, contrib, 0.0)      # empty / padding bins
    return jnp.sum(contrib, axis=reduce_axis, keepdims=True)   # (1, 1)


def _ue_kernel_cols(logits_ref, labels_ref, out_ref,
                    cnt_ref, sconf_ref, sacc_ref,
                    *, n_total, lowers, uppers):
    """Lane-dense path (C < 128): logits block is (C, tile_n), samples on lanes."""
    i = pl.program_id(0)

    @pl.when(i == 0)
    def _():
        cnt_ref[...] = jnp.zeros_like(cnt_ref)
        sconf_ref[...] = jnp.zeros_like(sconf_ref)
        sacc_ref[...] = jnp.zeros_like(sacc_ref)

    x = logits_ref[...].astype(jnp.float32)              # (C, tn)
    labels = labels_ref[...]                             # (1, tn) int32
    c, tn = x.shape

    # Sample-validity mask for a (possibly padded) last tile.
    col = i * tn + lax.broadcasted_iota(jnp.int32, (1, tn), 1)
    valid = col < n_total                                 # (1, tn)

    # Softmax confidence without materializing probs: max prob = exp(0)/sum.
    m = jnp.max(x, axis=0, keepdims=True)                 # (1, tn)
    s = jnp.sum(jnp.exp(x - m), axis=0, keepdims=True)    # (1, tn)
    conf = jnp.where(valid, 1.0 / s, 0.0)                 # mask padding BEFORE binning

    # First-max class index on logits (softmax is monotone -> same argmax).
    cls = lax.broadcasted_iota(jnp.int32, x.shape, 0)
    pred = jnp.min(jnp.where(x == m, cls, c), axis=0, keepdims=True)
    acc = (pred == labels).astype(jnp.float32)            # (1, tn)

    # Single broadcast range test over the (sublane) bin axis: (lo, up].
    bidx = lax.broadcasted_iota(jnp.int32, (cnt_ref.shape[0], 1), 0)
    lo, up = _bin_edges(bidx, lowers, uppers)              # (nb_pad, 1)
    hit = (conf > lo) & (conf <= up)                       # (nb_pad, tn)

    cnt_ref[...] += jnp.sum(jnp.where(hit, 1.0, 0.0), axis=1, keepdims=True)
    sconf_ref[...] += jnp.sum(jnp.where(hit, conf, 0.0), axis=1, keepdims=True)
    sacc_ref[...] += jnp.sum(jnp.where(hit, acc, 0.0), axis=1, keepdims=True)

    @pl.when(i == pl.num_programs(0) - 1)
    def _():
        out_ref[...] = _finalize(cnt_ref[...], sconf_ref[...], sacc_ref[...],
                                 n_total, reduce_axis=0)


def _ue_kernel_rows(logits_ref, labels_ref, out_ref,
                    cnt_ref, sconf_ref, sacc_ref,
                    *, n_total, lowers, uppers):
    """Row-major path (C >= 128): logits block is (tile_n, C), bins on lanes."""
    i = pl.program_id(0)

    @pl.when(i == 0)
    def _():
        cnt_ref[...] = jnp.zeros_like(cnt_ref)
        sconf_ref[...] = jnp.zeros_like(sconf_ref)
        sacc_ref[...] = jnp.zeros_like(sacc_ref)

    x = logits_ref[...].astype(jnp.float32)               # (tn, C)
    labels = labels_ref[...]                               # (tn, 1) int32
    tn, c = x.shape

    row = i * tn + lax.broadcasted_iota(jnp.int32, (tn, 1), 0)
    valid = row < n_total                                   # (tn, 1)

    m = jnp.max(x, axis=1, keepdims=True)                   # (tn, 1)
    s = jnp.sum(jnp.exp(x - m), axis=1, keepdims=True)
    conf = jnp.where(valid, 1.0 / s, 0.0)

    cls = lax.broadcasted_iota(jnp.int32, x.shape, 1)
    pred = jnp.min(jnp.where(x == m, cls, c), axis=1, keepdims=True)
    acc = (pred == labels).astype(jnp.float32)               # (tn, 1)

    lane = lax.broadcasted_iota(jnp.int32, (1, _LANES), 1)
    lo, up = _bin_edges(lane, lowers, uppers)                # (1, 128)
    hit = (conf > lo) & (conf <= up)                         # (tn, 128)

    cnt_ref[...] += jnp.sum(jnp.where(hit, 1.0, 0.0), axis=0, keepdims=True)
    sconf_ref[...] += jnp.sum(jnp.where(hit, conf, 0.0), axis=0, keepdims=True)
    sacc_ref[...] += jnp.sum(jnp.where(hit, acc, 0.0), axis=0, keepdims=True)

    @pl.when(i == pl.num_programs(0) - 1)
    def _():
        out_ref[...] = _finalize(cnt_ref[...], sconf_ref[...], sacc_ref[...],
                                 n_total, reduce_axis=1)


def _round_tile(tile_n, n, quantum):
    tile_n = max(1, int(tile_n))
    if tile_n < n:
        tile_n = max(quantum, (tile_n // quantum) * quantum)
    return min(tile_n, n)


def ue_loss(logits, labels, n_bins=N_BINS, tile_n=None, force_layout=None):
    """Pallas implementation of UELoss.forward(logits, labels). Returns shape (1,)."""
    n, c = logits.shape
    assert n_bins <= _LANES
    bounds = np.linspace(0.0, 1.0, n_bins + 1)
    lowers = tuple(float(b) for b in bounds[:-1])
    uppers = tuple(float(b) for b in bounds[1:])
    itemsize = jnp.dtype(logits.dtype).itemsize
    nb_pad = max(8, ((n_bins + 7) // 8) * 8)

    if force_layout is None:
        use_cols = c < _LANES
    else:
        use_cols = (force_layout == "cols")

    if use_cols:
        # Lane-dense layout: samples on the 128-lane axis, classes on sublanes.
        c_sub = ((c + 7) // 8) * 8                                 # sublane-padded classes in VMEM
        per_col_vmem = 2 * (c_sub * itemsize) + 2 * (8 * 4)        # dbl-buffered logits + (1,tn) labels
        if tile_n is None:
            tile_n = _TARGET_BLOCK_BYTES // max(1, c * itemsize)   # ~2 MiB of *real* HBM data
            tile_n = min(tile_n, _VMEM_INPUT_BUDGET // max(1, per_col_vmem), _MAX_TILE_N)
        tile_n = _round_tile(tile_n, n, _LANES)

        logits_in = jnp.transpose(logits)                          # (C, N) — layout plumbing only
        labels_in = labels.astype(jnp.int32).reshape(1, n)         # lane-dense labels
        kernel = functools.partial(_ue_kernel_cols, n_total=n,
                                   lowers=lowers, uppers=uppers)
        in_specs = [pl.BlockSpec((c, tile_n), lambda i: (0, i)),
                    pl.BlockSpec((1, tile_n), lambda i: (0, i))]
        scratch_shapes = [pltpu.VMEM((nb_pad, 1), jnp.float32) for _ in range(3)]
    else:
        # Row-major layout (C >= 128 is already lane-dense; no extra transpose pass).
        c_lane = ((c + _LANES - 1) // _LANES) * _LANES             # lane-padded classes in VMEM
        per_row_vmem = 2 * (c_lane * itemsize) + 2 * (_LANES * 4)  # logits + lane-padded (tn,1) labels
        if tile_n is None:
            tile_n = _TARGET_BLOCK_BYTES // max(1, c * itemsize)
            tile_n = min(tile_n, _VMEM_INPUT_BUDGET // max(1, per_row_vmem), 8192)
        tile_n = _round_tile(tile_n, n, 16)                        # mult of 16 (bf16 sublane tiling)

        logits_in = logits
        labels_in = labels.astype(jnp.int32).reshape(n, 1)
        kernel = functools.partial(_ue_kernel_rows, n_total=n,
                                   lowers=lowers, uppers=uppers)
        in_specs = [pl.BlockSpec((tile_n, c), lambda i: (i, 0)),
                    pl.BlockSpec((tile_n, 1), lambda i: (i, 0))]
        scratch_shapes = [pltpu.VMEM((1, _LANES), jnp.float32) for _ in range(3)]

    grid = (pl.cdiv(n, tile_n),)

    out = pl.pallas_call(
        kernel,
        out_shape=jax.ShapeDtypeStruct((1, 1), jnp.float32),
        grid_spec=pltpu.PrefetchScalarGridSpec(
            num_scalar_prefetch=0,
            grid=grid,
            in_specs=in_specs,
            out_specs=pl.BlockSpec((1, 1), lambda i: (0, 0)),
            scratch_shapes=scratch_shapes,
        ),
        compiler_params=pltpu.CompilerParams(
            dimension_semantics=("arbitrary",),
            vmem_limit_bytes=_VMEM_LIMIT_BYTES),
    )(logits_in, labels_in)
    return out.reshape(1)


def ue_loss_reference(logits, labels, n_bins=N_BINS):
    """Pure-JAX reference mirroring the PyTorch module."""
    bounds = np.linspace(0.0, 1.0, n_bins + 1)
    probs = jax.nn.softmax(logits.astype(jnp.float32), axis=1)
    conf = jnp.max(probs, axis=1)
    pred = jnp.argmax(probs, axis=1)
    acc = (pred == labels).astype(jnp.float32)
    n = conf.shape[0]
    ue = jnp.zeros((1,), jnp.float32)
    for lo, up in zip(bounds[:-1], bounds[1:]):
        in_bin = (conf > float(lo)) & (conf <= float(up))
        count = jnp.sum(in_bin.astype(jnp.float32))
        prop = count / n
        safe = jnp.maximum(count, 1.0)
        avg_conf = jnp.sum(jnp.where(in_bin, conf, 0.0)) / safe
        acc_bin = jnp.sum(jnp.where(in_bin, acc, 0.0)) / safe
        contrib = avg_conf * jnp.maximum(acc_bin - avg_conf, 0.0) * prop
        ue = ue + jnp.where(count > 0.0, contrib, 0.0)
    return ue


if __name__ == "__main__":
    key = jax.random.PRNGKey(0)
    keys = jax.random.split(key, 4)

    def make_case(k, n, c, frac_correct, scale, dtype=jnp.float32):
        k1, k2 = jax.random.split(k)
        logits = (scale * jax.random.normal(k1, (n, c), dtype=jnp.float32)).astype(dtype)
        correct = jnp.argmax(logits.astype(jnp.float32), axis=1).astype(jnp.int32)
        rand_lab = jax.random.randint(k2, (n,), 0, c, dtype=jnp.int32)
        labels = jnp.where(jnp.arange(n) < int(frac_correct * n), correct, rand_lab)
        return logits, labels

    def check(logits, labels, **kw):
        out = jax.block_until_ready(ue_loss(logits, labels, **kw))
        ref = jax.block_until_ready(ue_loss_reference(logits, labels))
        np.testing.assert_allclose(np.asarray(out), np.asarray(ref),
                                   atol=1e-5, rtol=1e-5)

    # Case 1: small C, single lane-dense tile (transposed path).
    check(*make_case(keys[0], 64, 16, 0.75, 0.5))

    # Case 2: small C, multiple grid steps with a ragged tail (transposed path).
    check(*make_case(keys[1], 300, 10, 0.7, 0.4), tile_n=128)

    # Case 3: C >= 128 keeps the row-major layout; ragged last tile.
    check(*make_case(keys[2], 400, 128, 0.6, 0.3), tile_n=128)

    # Case 4: bf16 logits consumed directly (f32 math happens inside the kernel).
    check(*make_case(keys[3], 256, 16, 0.7, 0.5, dtype=jnp.bfloat16))

    print("KERNEL_OK")
</pallas_src>

<mosaic_0001>
module attributes {stable_mosaic.version = 11 : i64} {
  func.func @_ue_kernel_cols(%arg0: i32, %arg1: memref<16x64xf32, #tpu.memory_space<vmem>>, %arg2: memref<1x64xi32, #tpu.memory_space<vmem>>, %arg3: memref<1x1xf32, #tpu.memory_space<vmem>>, %arg4: memref<16x1xf32, #tpu.memory_space<vmem>>, %arg5: memref<16x1xf32, #tpu.memory_space<vmem>>, %arg6: memref<16x1xf32, #tpu.memory_space<vmem>>) attributes {dimension_semantics = [#tpu.dimension_semantics<arbitrary>], iteration_bounds = array<i64: 1>, scalar_prefetch = 0 : i64, scratch_operands = 3 : i64, tpu.core_type = #tpu.core_type<tc>, window_params = [{transform_indices = @transform_0, window_bounds = array<i64: 16, 64>}, {transform_indices = @transform_1, window_bounds = array<i64: 1, 64>}, {pipeline_mode = #tpu.pipeline_mode<synchronous>, transform_indices = @transform_2, window_bounds = array<i64: 1, 1>}]} {
    %c0_i32 = arith.constant 0 : i32
    %0 = arith.cmpi eq, %arg0, %c0_i32 : i32
    %1 = arith.extui %0 : i1 to i32
    %c0_i32_0 = arith.constant 0 : i32
    %2 = arith.cmpi ne, %1, %c0_i32_0 : i32
    scf.if %2 {
      %cst_78 = arith.constant 0.000000e+00 : f32
      %191 = vector.broadcast %cst_78 : f32 to vector<16x1xf32>
      %c0_79 = arith.constant 0 : index
      %c0_80 = arith.constant 0 : index
      %192 = vector.load %arg4[%c0_79, %c0_80] : memref<16x1xf32, #tpu.memory_space<vmem>>, vector<16x1xf32>
      tpu.vector_store %arg4[%c0_79, %c0_80], %191 {strides = array<i32>} : memref<16x1xf32, #tpu.memory_space<vmem>>, vector<16x1xf32>,
      %cst_81 = arith.constant 0.000000e+00 : f32
      %193 = vector.broadcast %cst_81 : f32 to vector<16x1xf32>
      %c0_82 = arith.constant 0 : index
      %c0_83 = arith.constant 0 : index
      %194 = vector.load %arg5[%c0_82, %c0_83] : memref<16x1xf32, #tpu.memory_space<vmem>>, vector<16x1xf32>
      tpu.vector_store %arg5[%c0_82, %c0_83], %193 {strides = array<i32>} : memref<16x1xf32, #tpu.memory_space<vmem>>, vector<16x1xf32>,
      %cst_84 = arith.constant 0.000000e+00 : f32
      %195 = vector.broadcast %cst_84 : f32 to vector<16x1xf32>
      %c0_85 = arith.constant 0 : index
      %c0_86 = arith.constant 0 : index
      %196 = vector.load %arg6[%c0_85, %c0_86] : memref<16x1xf32, #tpu.memory_space<vmem>>, vector<16x1xf32>
      tpu.vector_store %arg6[%c0_85, %c0_86], %195 {strides = array<i32>} : memref<16x1xf32, #tpu.memory_space<vmem>>, vector<16x1xf32>,
    } else {
    }
    %c0 = arith.constant 0 : index
    %c0_1 = arith.constant 0 : index
    %3 = vector.load %arg1[%c0, %c0_1] : memref<16x64xf32, #tpu.memory_space<vmem>>, vector<16x64xf32>
    %c0_2 = arith.constant 0 : index
    %c0_3 = arith.constant 0 : index
    %4 = vector.load %arg2[%c0_2, %c0_3] : memref<1x64xi32, #tpu.memory_space<vmem>>, vector<1x64xi32>
    %c64_i32 = arith.constant 64 : i32
    %5 = arith.muli %arg0, %c64_i32 : i32
    %6 = tpu.iota {dimensions = array<i32: 1>} : vector<1x64xi32>
    %7 = vector.broadcast %5 : i32 to vector<1x64xi32>
    %8 = arith.addi %7, %6 : vector<1x64xi32>
    %c64_i32_4 = arith.constant 64 : i32
    %9 = vector.broadcast %c64_i32_4 : i32 to vector<1x64xi32>
    %10 = arith.cmpi slt, %8, %9 : vector<1x64xi32>
    %cst = arith.constant dense<0xFF800000> : vector<64xf32>
    %11 = vector.multi_reduction <maximumf>, %3, %cst [0] : vector<16x64xf32> to vector<64xf32>
    %12 = vector.shape_cast %11 : vector<64xf32> to vector<1x64xf32>
    %13 = vector.broadcast %12 : vector<1x64xf32> to vector<16x64xf32>
    %14 = arith.subf %3, %13 : vector<16x64xf32>
    %15 = math.exp %14 : vector<16x64xf32>
    %cst_5 = arith.constant dense<0.000000e+00> : vector<64xf32>
    %16 = vector.multi_reduction <add>, %15, %cst_5 [0] : vector<16x64xf32> to vector<64xf32>
    %17 = vector.shape_cast %16 : vector<64xf32> to vector<1x64xf32>
    %cst_6 = arith.constant 1.000000e+00 : f32
    %18 = vector.broadcast %cst_6 : f32 to vector<1x64xf32>
    %19 = arith.divf %18, %17 : vector<1x64xf32>
    %cst_7 = arith.constant 0.000000e+00 : f32
    %20 = vector.broadcast %cst_7 : f32 to vector<1x64xf32>
    %21 = arith.select %10, %19, %20 : vector<1x64xi1>, vector<1x64xf32>
    %22 = tpu.iota {dimensions = array<i32: 0>} : vector<16x64xi32>
    %23 = vector.broadcast %12 : vector<1x64xf32> to vector<16x64xf32>
    %24 = arith.cmpf oeq, %3, %23 : vector<16x64xf32>
    %c16_i32 = arith.constant 16 : i32
    %25 = vector.broadcast %c16_i32 : i32 to vector<16x64xi32>
    %26 = arith.select %24, %22, %25 : vector<16x64xi1>, vector<16x64xi32>
    %cst_8 = arith.constant dense<2147483647> : vector<64xi32>
    %27 = vector.multi_reduction <minsi>, %26, %cst_8 [0] : vector<16x64xi32> to vector<64xi32>
    %28 = vector.shape_cast %27 : vector<64xi32> to vector<1x64xi32>
    %29 = arith.cmpi eq, %28, %4 : vector<1x64xi32>
    %30 = arith.extui %29 : vector<1x64xi1> to vector<1x64xi32>
    %31 = arith.sitofp %30 : vector<1x64xi32> to vector<1x64xf32>
    %32 = tpu.iota {dimensions = array<i32: 0>} : vector<16x1xi32>
    %cst_9 = arith.constant 2.000000e+00 : f32
    %33 = vector.broadcast %cst_9 : f32 to vector<16x1xf32>
    %cst_10 = arith.constant 2.000000e+00 : f32
    %34 = vector.broadcast %cst_10 : f32 to vector<16x1xf32>
    %c0_i32_11 = arith.constant 0 : i32
    %35 = vector.broadcast %c0_i32_11 : i32 to vector<16x1xi32>
    %36 = arith.cmpi eq, %32, %35 : vector<16x1xi32>
    %cst_12 = arith.constant 0.000000e+00 : f32
    %37 = vector.broadcast %cst_12 : f32 to vector<16x1xf32>
    %38 = arith.select %36, %37, %33 : vector<16x1xi1>, vector<16x1xf32>
    %c0_i32_13 = arith.constant 0 : i32
    %39 = vector.broadcast %c0_i32_13 : i32 to vector<16x1xi32>
    %40 = arith.cmpi eq, %32, %39 : vector<16x1xi32>
    %cst_14 = arith.constant 0.0666666701 : f32
    %41 = vector.broadcast %cst_14 : f32 to vector<16x1xf32>
    %42 = arith.select %40, %41, %34 : vector<16x1xi1>, vector<16x1xf32>
    %c1_i32 = arith.constant 1 : i32
    %43 = vector.broadcast %c1_i32 : i32 to vector<16x1xi32>
    %44 = arith.cmpi eq, %32, %43 : vector<16x1xi32>
    %cst_15 = arith.constant 0.0666666701 : f32
    %45 = vector.broadcast %cst_15 : f32 to vector<16x1xf32>
    %46 = arith.select %44, %45, %38 : vector<16x1xi1>, vector<16x1xf32>
    %c1_i32_16 = arith.constant 1 : i32
    %47 = vector.broadcast %c1_i32_16 : i32 to vector<16x1xi32>
    %48 = arith.cmpi eq, %32, %47 : vector<16x1xi32>
    %cst_17 = arith.constant 0.13333334 : f32
    %49 = vector.broadcast %cst_17 : f32 to vector<16x1xf32>
    %50 = arith.select %48, %49, %42 : vector<16x1xi1>, vector<16x1xf32>
    %c2_i32 = arith.constant 2 : i32
    %51 = vector.broadcast %c2_i32 : i32 to vector<16x1xi32>
    %52 = arith.cmpi eq, %32, %51 : vector<16x1xi32>
    %cst_18 = arith.constant 0.13333334 : f32
    %53 = vector.broadcast %cst_18 : f32 to vector<16x1xf32>
    %54 = arith.select %52, %53, %46 : vector<16x1xi1>, vector<16x1xf32>
    %c2_i32_19 = arith.constant 2 : i32
    %55 = vector.broadcast %c2_i32_19 : i32 to vector<16x1xi32>
    %56 = arith.cmpi eq, %32, %55 : vector<16x1xi32>
    %cst_20 = arith.constant 2.000000e-01 : f32
    %57 = vector.broadcast %cst_20 : f32 to vector<16x1xf32>
    %58 = arith.select %56, %57, %50 : vector<16x1xi1>, vector<16x1xf32>
    %c3_i32 = arith.constant 3 : i32
    %59 = vector.broadcast %c3_i32 : i32 to vector<16x1xi32>
    %60 = arith.cmpi eq, %32, %59 : vector<16x1xi32>
    %cst_21 = arith.constant 2.000000e-01 : f32
    %61 = vector.broadcast %cst_21 : f32 to vector<16x1xf32>
    %62 = arith.select %60, %61, %54 : vector<16x1xi1>, vector<16x1xf32>
    %c3_i32_22 = arith.constant 3 : i32
    %63 = vector.broadcast %c3_i32_22 : i32 to vector<16x1xi32>
    %64 = arith.cmpi eq, %32, %63 : vector<16x1xi32>
    %cst_23 = arith.constant 0.266666681 : f32
    %65 = vector.broadcast %cst_23 : f32 to vector<16x1xf32>
    %66 = arith.select %64, %65, %58 : vector<16x1xi1>, vector<16x1xf32>
    %c4_i32 = arith.constant 4 : i32
    %67 = vector.broadcast %c4_i32 : i32 to vector<16x1xi32>
    %68 = arith.cmpi eq, %32, %67 : vector<16x1xi32>
    %cst_24 = arith.constant 0.266666681 : f32
    %69 = vector.broadcast %cst_24 : f32 to vector<16x1xf32>
    %70 = arith.select %68, %69, %62 : vector<16x1xi1>, vector<16x1xf32>
    %c4_i32_25 = arith.constant 4 : i32
    %71 = vector.broadcast %c4_i32_25 : i32 to vector<16x1xi32>
    %72 = arith.cmpi eq, %32, %71 : vector<16x1xi32>
    %cst_26 = arith.constant 0.333333343 : f32
    %73 = vector.broadcast %cst_26 : f32 to vector<16x1xf32>
    %74 = arith.select %72, %73, %66 : vector<16x1xi1>, vector<16x1xf32>
    %c5_i32 = arith.constant 5 : i32
    %75 = vector.broadcast %c5_i32 : i32 to vector<16x1xi32>
    %76 = arith.cmpi eq, %32, %75 : vector<16x1xi32>
    %cst_27 = arith.constant 0.333333343 : f32
    %77 = vector.broadcast %cst_27 : f32 to vector<16x1xf32>
    %78 = arith.select %76, %77, %70 : vector<16x1xi1>, vector<16x1xf32>
    %c5_i32_28 = arith.constant 5 : i32
    %79 = vector.broadcast %c5_i32_28 : i32 to vector<16x1xi32>
    %80 = arith.cmpi eq, %32, %79 : vector<16x1xi32>
    %cst_29 = arith.constant 4.000000e-01 : f32
    %81 = vector.broadcast %cst_29 : f32 to vector<16x1xf32>
    %82 = arith.select %80, %81, %74 : vector<16x1xi1>, vector<16x1xf32>
    %c6_i32 = arith.constant 6 : i32
    %83 = vector.broadcast %c6_i32 : i32 to vector<16x1xi32>
    %84 = arith.cmpi eq, %32, %83 : vector<16x1xi32>
    %cst_30 = arith.constant 4.000000e-01 : f32
    %85 = vector.broadcast %cst_30 : f32 to vector<16x1xf32>
    %86 = arith.select %84, %85, %78 : vector<16x1xi1>, vector<16x1xf32>
    %c6_i32_31 = arith.constant 6 : i32
    %87 = vector.broadcast %c6_i32_31 : i32 to vector<16x1xi32>
    %88 = arith.cmpi eq, %32, %87 : vector<16x1xi32>
    %cst_32 = arith.constant 0.466666669 : f32
    %89 = vector.broadcast %cst_32 : f32 to vector<16x1xf32>
    %90 = arith.select %88, %89, %82 : vector<16x1xi1>, vector<16x1xf32>
    %c7_i32 = arith.constant 7 : i32
    %91 = vector.broadcast %c7_i32 : i32 to vector<16x1xi32>
    %92 = arith.cmpi eq, %32, %91 : vector<16x1xi32>
    %cst_33 = arith.constant 0.466666669 : f32
    %93 = vector.broadcast %cst_33 : f32 to vector<16x1xf32>
    %94 = arith.select %92, %93, %86 : vector<16x1xi1>, vector<16x1xf32>
    %c7_i32_34 = arith.constant 7 : i32
    %95 = vector.broadcast %c7_i32_34 : i32 to vector<16x1xi32>
    %96 = arith.cmpi eq, %32, %95 : vector<16x1xi32>
    %cst_35 = arith.constant 0.533333361 : f32
    %97 = vector.broadcast %cst_35 : f32 to vector<16x1xf32>
    %98 = arith.select %96, %97, %90 : vector<16x1xi1>, vector<16x1xf32>
    %c8_i32 = arith.constant 8 : i32
    %99 = vector.broadcast %c8_i32 : i32 to vector<16x1xi32>
    %100 = arith.cmpi eq, %32, %99 : vector<16x1xi32>
    %cst_36 = arith.constant 0.533333361 : f32
    %101 = vector.broadcast %cst_36 : f32 to vector<16x1xf32>
    %102 = arith.select %100, %101, %94 : vector<16x1xi1>, vector<16x1xf32>
    %c8_i32_37 = arith.constant 8 : i32
    %103 = vector.broadcast %c8_i32_37 : i32 to vector<16x1xi32>
    %104 = arith.cmpi eq, %32, %103 : vector<16x1xi32>
    %cst_38 = arith.constant 6.000000e-01 : f32
    %105 = vector.broadcast %cst_38 : f32 to vector<16x1xf32>
    %106 = arith.select %104, %105, %98 : vector<16x1xi1>, vector<16x1xf32>
    %c9_i32 = arith.constant 9 : i32
    %107 = vector.broadcast %c9_i32 : i32 to vector<16x1xi32>
    %108 = arith.cmpi eq, %32, %107 : vector<16x1xi32>
    %cst_39 = arith.constant 6.000000e-01 : f32
    %109 = vector.broadcast %cst_39 : f32 to vector<16x1xf32>
    %110 = arith.select %108, %109, %102 : vector<16x1xi1>, vector<16x1xf32>
    %c9_i32_40 = arith.constant 9 : i32
    %111 = vector.broadcast %c9_i32_40 : i32 to vector<16x1xi32>
    %112 = arith.cmpi eq, %32, %111 : vector<16x1xi32>
    %cst_41 = arith.constant 0.666666686 : f32
    %113 = vector.broadcast %cst_41 : f32 to vector<16x1xf32>
    %114 = arith.select %112, %113, %106 : vector<16x1xi1>, vector<16x1xf32>
    %c10_i32 = arith.constant 10 : i32
    %115 = vector.broadcast %c10_i32 : i32 to vector<16x1xi32>
    %116 = arith.cmpi eq, %32, %115 : vector<16x1xi32>
    %cst_42 = arith.constant 0.666666686 : f32
    %117 = vector.broadcast %cst_42 : f32 to vector<16x1xf32>
    %118 = arith.select %116, %117, %110 : vector<16x1xi1>, vector<16x1xf32>
    %c10_i32_43 = arith.constant 10 : i32
    %119 = vector.broadcast %c10_i32_43 : i32 to vector<16x1xi32>
    %120 = arith.cmpi eq, %32, %119 : vector<16x1xi32>
    %cst_44 = arith.constant 0.733333349 : f32
    %121 = vector.broadcast %cst_44 : f32 to vector<16x1xf32>
    %122 = arith.select %120, %121, %114 : vector<16x1xi1>, vector<16x1xf32>
    %c11_i32 = arith.constant 11 : i32
    %123 = vector.broadcast %c11_i32 : i32 to vector<16x1xi32>
    %124 = arith.cmpi eq, %32, %123 : vector<16x1xi32>
    %cst_45 = arith.constant 0.733333349 : f32
    %125 = vector.broadcast %cst_45 : f32 to vector<16x1xf32>
    %126 = arith.select %124, %125, %118 : vector<16x1xi1>, vector<16x1xf32>
    %c11_i32_46 = arith.constant 11 : i32
    %127 = vector.broadcast %c11_i32_46 : i32 to vector<16x1xi32>
    %128 = arith.cmpi eq, %32, %127 : vector<16x1xi32>
    %cst_47 = arith.constant 8.000000e-01 : f32
    %129 = vector.broadcast %cst_47 : f32 to vector<16x1xf32>
    %130 = arith.select %128, %129, %122 : vector<16x1xi1>, vector<16x1xf32>
    %c12_i32 = arith.constant 12 : i32
    %131 = vector.broadcast %c12_i32 : i32 to vector<16x1xi32>
    %132 = arith.cmpi eq, %32, %131 : vector<16x1xi32>
    %cst_48 = arith.constant 8.000000e-01 : f32
    %133 = vector.broadcast %cst_48 : f32 to vector<16x1xf32>
    %134 = arith.select %132, %133, %126 : vector<16x1xi1>, vector<16x1xf32>
    %c12_i32_49 = arith.constant 12 : i32
    %135 = vector.broadcast %c12_i32_49 : i32 to vector<16x1xi32>
    %136 = arith.cmpi eq, %32, %135 : vector<16x1xi32>
    %cst_50 = arith.constant 0.866666674 : f32
    %137 = vector.broadcast %cst_50 : f32 to vector<16x1xf32>
    %138 = arith.select %136, %137, %130 : vector<16x1xi1>, vector<16x1xf32>
    %c13_i32 = arith.constant 13 : i32
    %139 = vector.broadcast %c13_i32 : i32 to vector<16x1xi32>
    %140 = arith.cmpi eq, %32, %139 : vector<16x1xi32>
    %cst_51 = arith.constant 0.866666674 : f32
    %141 = vector.broadcast %cst_51 : f32 to vector<16x1xf32>
    %142 = arith.select %140, %141, %134 : vector<16x1xi1>, vector<16x1xf32>
    %c13_i32_52 = arith.constant 13 : i32
    %143 = vector.broadcast %c13_i32_52 : i32 to vector<16x1xi32>
    %144 = arith.cmpi eq, %32, %143 : vector<16x1xi32>
    %cst_53 = arith.constant 0.933333337 : f32
    %145 = vector.broadcast %cst_53 : f32 to vector<16x1xf32>
    %146 = arith.select %144, %145, %138 : vector<16x1xi1>, vector<16x1xf32>
    %c14_i32 = arith.constant 14 : i32
    %147 = vector.broadcast %c14_i32 : i32 to vector<16x1xi32>
    %148 = arith.cmpi eq, %32, %147 : vector<16x1xi32>
    %cst_54 = arith.constant 0.933333337 : f32
    %149 = vector.broadcast %cst_54 : f32 to vector<16x1xf32>
    %150 = arith.select %148, %149, %142 : vector<16x1xi1>, vector<16x1xf32>
    %c14_i32_55 = arith.constant 14 : i32
    %151 = vector.broadcast %c14_i32_55 : i32 to vector<16x1xi32>
    %152 = arith.cmpi eq, %32, %151 : vector<16x1xi32>
    %cst_56 = arith.constant 1.000000e+00 : f32
    %153 = vector.broadcast %cst_56 : f32 to vector<16x1xf32>
    %154 = arith.select %152, %153, %146 : vector<16x1xi1>, vector<16x1xf32>
    %155 = vector.broadcast %21 : vector<1x64xf32> to vector<16x64xf32>
    %156 = vector.broadcast %150 : vector<16x1xf32> to vector<16x64xf32>
    %157 = arith.cmpf ogt, %155, %156 : vector<16x64xf32>
    %158 = vector.broadcast %21 : vector<1x64xf32> to vector<16x64xf32>
    %159 = vector.broadcast %154 : vector<16x1xf32> to vector<16x64xf32>
    %160 = arith.cmpf ole, %158, %159 : vector<16x64xf32>
    %161 = arith.andi %157, %160 : vector<16x64xi1>
    %c0_57 = arith.constant 0 : index
    %c0_58 = arith.constant 0 : index
    %162 = vector.load %arg4[%c0_57, %c0_58] : memref<16x1xf32, #tpu.memory_space<vmem>>, vector<16x1xf32>
    %cst_59 = arith.constant 1.000000e+00 : f32
    %cst_60 = arith.constant 0.000000e+00 : f32
    %163 = vector.broadcast %cst_59 : f32 to vector<16x64xf32>
    %164 = vector.broadcast %cst_60 : f32 to vector<16x64xf32>
    %165 = arith.select %161, %163, %164 : vector<16x64xi1>, vector<16x64xf32>
    %cst_61 = arith.constant dense<0.000000e+00> : vector<16xf32>
    %166 = vector.multi_reduction <add>, %165, %cst_61 [1] : vector<16x64xf32> to vector<16xf32>
    %167 = vector.shape_cast %166 : vector<16xf32> to vector<16x1xf32>
    %168 = arith.addf %162, %167 : vector<16x1xf32>
    %c0_62 = arith.constant 0 : index
    %c0_63 = arith.constant 0 : index
    %169 = vector.load %arg4[%c0_62, %c0_63] : memref<16x1xf32, #tpu.memory_space<vmem>>, vector<16x1xf32>
    tpu.vector_store %arg4[%c0_62, %c0_63], %168 {strides = array<i32>} : memref<16x1xf32, #tpu.memory_space<vmem>>, vector<16x1xf32>,
    %c0_64 = arith.constant 0 : index
    %c0_65 = arith.constant 0 : index
    %170 = vector.load %arg5[%c0_64, %c0_65] : memref<16x1xf32, #tpu.memory_space<vmem>>, vector<16x1xf32>
    %cst_66 = arith.constant 0.000000e+00 : f32
    %171 = vector.shape_cast %21 : vector<1x64xf32> to vector<1x64xf32>
    %172 = vector.broadcast %171 : vector<1x64xf32> to vector<16x64xf32>
    %173 = vector.broadcast %cst_66 : f32 to vector<16x64xf32>
    %174 = arith.select %161, %172, %173 : vector<16x64xi1>, vector<16x64xf32>
    %cst_67 = arith.constant dense<0.000000e+00> : vector<16xf32>
    %175 = vector.multi_reduction <add>, %174, %cst_67 [1] : vector<16x64xf32> to vector<16xf32>
    %176 = vector.shape_cast %175 : vector<16xf32> to vector<16x1xf32>
    %177 = arith.addf %170, %176 : vector<16x1xf32>
    %c0_68 = arith.constant 0 : index
    %c0_69 = arith.constant 0 : index
    %178 = vector.load %arg5[%c0_68, %c0_69] : memref<16x1xf32, #tpu.memory_space<vmem>>, vector<16x1xf32>
    tpu.vector_store %arg5[%c0_68, %c0_69], %177 {strides = array<i32>} : memref<16x1xf32, #tpu.memory_space<vmem>>, vector<16x1xf32>,
    %c0_70 = arith.constant 0 : index
    %c0_71 = arith.constant 0 : index
    %179 = vector.load %arg6[%c0_70, %c0_71] : memref<16x1xf32, #tpu.memory_space<vmem>>, vector<16x1xf32>
    %cst_72 = arith.constant 0.000000e+00 : f32
    %180 = vector.shape_cast %31 : vector<1x64xf32> to vector<1x64xf32>
    %181 = vector.broadcast %180 : vector<1x64xf32> to vector<16x64xf32>
    %182 = vector.broadcast %cst_72 : f32 to vector<16x64xf32>
    %183 = arith.select %161, %181, %182 : vector<16x64xi1>, vector<16x64xf32>
    %cst_73 = arith.constant dense<0.000000e+00> : vector<16xf32>
    %184 = vector.multi_reduction <add>, %183, %cst_73 [1] : vector<16x64xf32> to vector<16xf32>
    %185 = vector.shape_cast %184 : vector<16xf32> to vector<16x1xf32>
    %186 = arith.addf %179, %185 : vector<16x1xf32>
    %c0_74 = arith.constant 0 : index
    %c0_75 = arith.constant 0 : index
    %187 = vector.load %arg6[%c0_74, %c0_75] : memref<16x1xf32, #tpu.memory_space<vmem>>, vector<16x1xf32>
    tpu.vector_store %arg6[%c0_74, %c0_75], %186 {strides = array<i32>} : memref<16x1xf32, #tpu.memory_space<vmem>>, vector<16x1xf32>,
    %c0_i32_76 = arith.constant 0 : i32
    %188 = arith.cmpi eq, %arg0, %c0_i32_76 : i32
    %189 = arith.extui %188 : i1 to i32
    %c0_i32_77 = arith.constant 0 : i32
    %190 = arith.cmpi ne, %189, %c0_i32_77 : i32
    scf.if %190 {
      %c0_78 = arith.constant 0 : index
      %c0_79 = arith.constant 0 : index
      %191 = vector.load %arg4[%c0_78, %c0_79] : memref<16x1xf32, #tpu.memory_space<vmem>>, vector<16x1xf32>
      %c0_80 = arith.constant 0 : index
      %c0_81 = arith.constant 0 : index
      %192 = vector.load %arg5[%c0_80, %c0_81] : memref<16x1xf32, #tpu.memory_space<vmem>>, vector<16x1xf32>
      %c0_82 = arith.constant 0 : index
      %c0_83 = arith.constant 0 : index
      %193 = vector.load %arg6[%c0_82, %c0_83] : memref<16x1xf32, #tpu.memory_space<vmem>>, vector<16x1xf32>
      %cst_84 = arith.constant 6.400000e+01 : f32
      %194 = vector.broadcast %cst_84 : f32 to vector<16x1xf32>
      %195 = arith.divf %191, %194 : vector<16x1xf32>
      %cst_85 = arith.constant 1.000000e+00 : f32
      %196 = vector.broadcast %cst_85 : f32 to vector<16x1xf32>
      %197 = arith.maximumf %191, %196 : vector<16x1xf32>
      %198 = arith.divf %192, %197 : vector<16x1xf32>
      %199 = arith.divf %193, %197 : vector<16x1xf32>
      %200 = arith.subf %199, %198 : vector<16x1xf32>
      %cst_86 = arith.constant 0.000000e+00 : f32
      %201 = vector.broadcast %cst_86 : f32 to vector<16x1xf32>
      %202 = arith.maximumf %200, %201 : vector<16x1xf32>
      %203 = arith.mulf %198, %202 : vector<16x1xf32>
      %204 = arith.mulf %203, %195 : vector<16x1xf32>
      %cst_87 = arith.constant 0.000000e+00 : f32
      %205 = vector.broadcast %cst_87 : f32 to vector<16x1xf32>
      %206 = arith.cmpf ogt, %191, %205 : vector<16x1xf32>
      %cst_88 = arith.constant 0.000000e+00 : f32
      %207 = vector.broadcast %cst_88 : f32 to vector<16x1xf32>
      %208 = arith.select %206, %204, %207 : vector<16x1xi1>, vector<16x1xf32>
      %cst_89 = arith.constant dense<0.000000e+00> : vector<1xf32>
      %209 = vector.multi_reduction <add>, %208, %cst_89 [0] : vector<16x1xf32> to vector<1xf32>
      %210 = vector.shape_cast %209 : vector<1xf32> to vector<1x1xf32>
      %c0_90 = arith.constant 0 : index
      %c0_91 = arith.constant 0 : index
      %211 = vector.load %arg3[%c0_90, %c0_91] : memref<1x1xf32, #tpu.memory_space<vmem>>, vector<1x1xf32>
      tpu.vector_store %arg3[%c0_90, %c0_91], %210 {strides = array<i32>} : memref<1x1xf32, #tpu.memory_space<vmem>>, vector<1x1xf32>,
    } else {
    }
    return
  }
  func.func @transform_0(%arg0: i32) -> (i32, i32) {
    %c0_i32 = arith.constant 0 : i32
    %c0_i32_0 = arith.constant 0 : i32
    return %c0_i32, %arg0 : i32, i32
  }
  func.func @transform_1(%arg0: i32) -> (i32, i32) {
    %c0_i32 = arith.constant 0 : i32
    %c0_i32_0 = arith.constant 0 : i32
    return %c0_i32, %arg0 : i32, i32
  }
  func.func @transform_2(%arg0: i32) -> (i32, i32) {
    %c0_i32 = arith.constant 0 : i32
    %c0_i32_0 = arith.constant 0 : i32
    %c0_i32_1 = arith.constant 0 : i32
    return %c0_i32, %c0_i32_0 : i32, i32
  }
}

</mosaic_0001>

<bundles_post_ra>
// kernel: tpu_custom_call.1
= control target key start
LH: loop header
LB: loop body
LE: loop exit
PB: predicated region body
PF: predicated region fallthrough
CT: control target
= control target key end

     0   :  { %7 = vsyncpa [#allocation6], 0  ;;  %s491_s0 = inlined_call_operand.hbm [shape: f32[16,64], index: 0, kind: input, shape index: {}]   ;;  %s492_s1 = inlined_call_operand.vmem [shape: s32[1,64], index: 1, kind: input, shape index: {}]   ;;  %s493_s2 = inlined_call_operand.hbm [shape: f32[1,1], index: 2, kind: output, shape index: {}]  }
   0x1   :  { %8 = vsyncpa [#allocation7], 0  ;;  %s363_s9 = smov [#allocation5]   ;;  %s315_s13 = scalar_lea.hbm %s491_s0, 256 }
   0x2   :  { %s14_s10 = sshll.u32 %s363_s9, 4  ;;  %p316_p0 = scmp.ne.s32.totalorder %s491_s0, %s315_s13  ;;  %s15_s10 = int_to_ptr.vmem [resolvable:$true] %s14_s10 }
   0x3   :  { %p319_p1 = scmp.lt.u32.totalorder %s315_s13, %s491_s0 }
   0x5   :  { %p321_p2 = pnand %p319_p1, %p316_p0 }
   0x7   :  { %324 = shalt.err (!%p321_p2)
}
   0x8   :  { %s325_s18 = scalar_lea.vmem %s15_s10, 256  ;;  %p330_p4 = scmp.lt.s32.totalorder %s15_s10, %s15_s10 }
   0x9   :  { %p326_p3 = scmp.ne.s32.totalorder %s15_s10, %s325_s18  ;;  %p331_p5 = scmp.lt.s32.totalorder %s325_s18, %s325_s18 }
   0xb   :  { %p332_p6 = por %p331_p5, %p330_p4 }
   0xd   :  { %p333_p7 = pnand %p332_p6, %p326_p3 }
   0xf   :  { %336 = shalt.err (!%p333_p7)
}
  0x10   :  { %s364_s19 = smov 128   ;;  %s365_s20 = smov 8  }
  0x11   :  { %20 = dma.hbm_to_vmem [thread:$0]  %s491_s0, 256, %s15_s10, [#allocation6], %s364_s19, %s364_s19, %s365_s20  }
  0x12   :  { %359 = dma.done.wait [#allocation6], 256  }
  0x13   :  { %360 = vsyncadd [#allocation6], 4294967040  ;;  %vm30_vm0 = vcmask 7168   ;;  %v366_v0 = vmov 0.0   ;;  %vm46_vm1 = vcmask 523264   ;;  %v37_v1 = vld [vmem:[#allocation5] sm:$0xff]  ;;  %v41_v8 = vlaneseq }
  0x14   :  { %31 = vst.msk [vmem:[#allocation2] sm:$0xff] %vm30_vm0, %v366_v0  ;;  %32 = vst.msk [vmem:[#allocation2 + $0x8] sm:$0xff] %vm30_vm0, %v366_v0  ;;  %v38_v2 = vld [vmem:[#allocation5 + $0x8] sm:$0xff]  ;;  %v47_v3 = vsel %vm46_vm1, %v37_v1, -inf  ;;  %v367_v31 = vmov 2.0  }
  0x15   :  { %33 = vst.msk [vmem:[#allocation3] sm:$0xff] %vm30_vm0, %v366_v0  ;;  %34 = vst.msk [vmem:[#allocation3 + $0x8] sm:$0xff] %vm30_vm0, %v366_v0  ;;  %v48_v4 = vsel %vm46_vm1, %v38_v2, -inf  ;;  %v411_v11 = vshrl.u32 %v41_v8, 7  ;;  %v42_v63 = vand.u32 127, %v41_v8 }
  0x16   :  { %35 = vst.msk [vmem:[#allocation4] sm:$0xff] %vm30_vm0, %v366_v0  ;;  %36 = vst.msk [vmem:[#allocation4 + $0x8] sm:$0xff] %vm30_vm0, %v366_v0  ;;  %v49_v5 = vmax.f32 %v47_v3, %v48_v4  ;;  %v39_v3 = vld [vmem:[%s492_s1] sm:$0x1]  ;;  %s368_s1 = smov [#allocation8]  }
  0x17   :  { %v414_v13 = vadd.s32 8, %v411_v11  ;;  %vm97_vm6 = vcmp.eq.s32.totalorder %v411_v11, 0  ;;  %vm103_vm7 = vcmp.eq.s32.totalorder %v411_v11, 1  ;;  %vm109_vm9 = vcmp.eq.s32.totalorder %v411_v11, 2  ;;  %s289_s24 = sshll.u32 %s368_s1, 4  ;;  %s290_s24 = int_to_ptr.vmem [resolvable:$true] %s289_s24 }
  0x18   :  { %v50_v6 = vrot.slane %v49_v5, 4  ;;  %v99_v32 = vsel %vm97_vm6, 0.0, %v367_v31  ;;  %v101_v33 = vsel %vm97_vm6, 0.06666667, %v367_v31  ;;  %vm115_vm12 = vcmp.eq.s32.totalorder %v411_v11, 3  ;;  %s337_s25 = scalar_lea.vmem %s290_s24, 16  ;;  %p342_p9 = scmp.lt.s32.totalorder %s290_s24, %s290_s24 }
  0x19   :  { %vm146_vm8 = vcmp.eq.s32.totalorder %v414_v13, 8  ;;  %v105_v37 = vsel %vm103_vm7, 0.06666667, %v99_v32  ;;  %v107_v38 = vsel %vm103_vm7, 0.13333334, %v101_v33  ;;  %vm152_vm10 = vcmp.eq.s32.totalorder %v414_v13, 9  ;;  %p338_p8 = scmp.ne.s32.totalorder %s290_s24, %s337_s25 }
  0x1a   :  { %v51_v7 = vmax.f32 %v49_v5, %v50_v6  ;;  %v148_v39 = vsel %vm146_vm8, 0.53333336, %v367_v31  ;;  %v150_v40 = vsel %vm146_vm8, 0.6, %v367_v31  ;;  %v111_v42 = vsel %vm109_vm9, 0.13333334, %v105_v37 }
  0x1b   :  { %v113_v43 = vsel %vm109_vm9, 0.2, %v107_v38  ;;  %v154_v45 = vsel %vm152_vm10, 0.6, %v148_v39  ;;  %v156_v46 = vsel %vm152_vm10, 0.6666667, %v150_v40 }
  0x1c   :  { %v52_v9 = vrot.slane %v51_v7, 2  ;;  %vm158_vm13 = vcmp.eq.s32.totalorder %v414_v13, 10  ;;  %v117_v49 = vsel %vm115_vm12, 0.2, %v111_v42  ;;  %v119_v50 = vsel %vm115_vm12, 0.26666668, %v113_v43 }
  0x1d   :  { %vm121_vm14 = vcmp.eq.s32.totalorder %v411_v11, 4  ;;  %v160_v51 = vsel %vm158_vm13, 0.6666667, %v154_v45  ;;  %v162_v52 = vsel %vm158_vm13, 0.73333335, %v156_v46  ;;  %vm164_vm15 = vcmp.eq.s32.totalorder %v414_v13, 11 }
  0x1e   :  { %v53_v10 = vmax.f32 %v51_v7, %v52_v9  ;;  %v123_v55 = vsel %vm121_vm14, 0.26666668, %v117_v49  ;;  %v125_v56 = vsel %vm121_vm14, 0.33333334, %v119_v50  ;;  %v166_v57 = vsel %vm164_vm15, 0.73333335, %v160_v51 }
  0x1f   :  { %v168_v58 = vsel %vm164_vm15, 0.8, %v162_v52  ;;  %vm176_vm6 = vcmp.eq.s32.totalorder %v414_v13, 13  ;;  %vm139_vm7 = vcmp.eq.s32.totalorder %v411_v11, 7  ;;  %vm182_vm8 = vcmp.eq.s32.totalorder %v414_v13, 14  ;;  %v223_v42 = vld [vmem:[#allocation4 + $0x8] sm:$0xff] }
  0x20   :  { %v54_v12 = vrot.slane %v53_v10, 1  ;;  %vm45_vm9 = vcmp.lt.s32.totalorder %v42_v63, 64  ;;  %s341_s26 = scalar_lea.vmem %s290_s24, 32 }
  0x21   :  { %p343_p10 = scmp.lt.s32.totalorder %s341_s26, %s337_s25 }
  0x22   :  { %v55_v14 = vmax.f32 %v53_v10, %v54_v12 }
  0x23   :  { %p344_p11 = por %p343_p10, %p342_p9 }
  0x24   :  { %v56_v15 = vsub.f32 %v37_v1, %v55_v14  ;;  %v57_v16 = vsub.f32 %v38_v2, %v55_v14  ;;  %vm77_vm2 = vcmp.eq.f32.partialorder %v37_v1, %v55_v14  ;;  %vm78_vm3 = vcmp.eq.f32.partialorder %v38_v2, %v55_v14 }
  0x25   :  { %v79_v17 = vsel %vm77_vm2, %v411_v11, 16  ;;  %v80_v18 = vsel %vm78_vm3, %v414_v13, 16  ;;  %vm127_vm2 = vcmp.eq.s32.totalorder %v411_v11, 5  ;;  %vm170_vm3 = vcmp.eq.s32.totalorder %v414_v13, 12  ;;  %p345_p12 = pnand %p344_p11, %p338_p8 }
  0x26   :  { %v58_v19 = vmul.f32 1.442695, %v56_v15  ;;  %v60_v20 = vmul.f32 1.442695, %v57_v16  ;;  %v81_v21 = vsel %vm46_vm1, %v79_v17, 2147483647 }
  0x27   :  { %v82_v22 = vsel %vm46_vm1, %v80_v18, 2147483647  ;;  %v129_v59 = vsel %vm127_vm2, 0.33333334, %v123_v55  ;;  %v131_v60 = vsel %vm127_vm2, 0.4, %v125_v56 }
  0x28   :  { %305 = vpow2.f32 %v58_v19  ;;  %vm83_vm4 = vcmp.lt.s32.totalorder %v81_v21, %v82_v22  ;;  %v172_v61 = vsel %vm170_vm3, 0.8, %v166_v57  ;;  %v174_v62 = vsel %vm170_vm3, 0.8666667, %v168_v58 }
  0x29   :  { %307 = vpow2.f32 %v60_v20  ;;  %v84_v23 = vsel %vm83_vm4, %v81_v21, %v82_v22  ;;  %vm133_vm4 = vcmp.eq.s32.totalorder %v411_v11, 6  ;;  %v178_v5 = vsel %vm176_vm6, 0.8666667, %v172_v61 }
  0x2a   :  { %v85_v24 = vrot.slane %v84_v23, 4  ;;  %v135_v1 = vsel %vm133_vm4, 0.4, %v129_v59  ;;  %v137_v2 = vsel %vm133_vm4, 0.46666667, %v131_v60  ;;  %v226_v14 = vsub.s32 0, %v411_v11 }
  0x2b   :  { %v180_v6 = vsel %vm176_vm6, 0.93333334, %v174_v62  ;;  %v141_v7 = vsel %vm139_vm7, 0.46666667, %v135_v1  ;;  %v143_v9 = vsel %vm139_vm7, 0.53333336, %v137_v2 }
  0x2c   :  { %vm86_vm5 = vcmp.lt.s32.totalorder %v84_v23, %v85_v24  ;;  %v184_v10 = vsel %vm182_vm8, 0.93333334, %v178_v5  ;;  %v186_v12 = vsel %vm182_vm8, 1.0, %v180_v6  ;;  %vm281_vm4 = vcmask 0  }
  0x2d   :  { %v87_v29 = vsel %vm86_vm5, %v84_v23, %v85_v24 }
  0x2e   :  { %v88_v35 = vrot.slane %v87_v29, 2 }
  0x30   :  { %vm89_vm11 = vcmp.lt.s32.totalorder %v87_v29, %v88_v35 }
  0x31   :  { %v90_v47 = vsel %vm89_vm11, %v87_v29, %v88_v35  ;;  %v193_v29 = vld [vmem:[#allocation2] sm:$0xff]  ;;  %v194_v35 = vld [vmem:[#allocation2 + $0x8] sm:$0xff] }
  0x32   :  { %v306_v25 = vpop.eup %305  ;;  %v91_v54 = vrot.slane %v90_v47, 1 }
  0x33   :  { %v308_v26 = vpop.eup %307  ;;  %v62_v27 = vsel %vm46_vm1, %v306_v25, 0.0 }
  0x34   :  { %v63_v28 = vsel %vm46_vm1, %v308_v26, 0.0  ;;  %vm92_vm5 = vcmp.lt.s32.totalorder %v90_v47, %v91_v54 }
  0x35   :  { %v64_v30 = vadd.f32 %v63_v28, %v62_v27  ;;  %v93_v4 = vsel %vm92_vm5, %v90_v47, %v91_v54 }
  0x36   :  { %vm94_vm10 = vcmp.eq.s32.totalorder %v93_v4, %v39_v3 }
  0x37   :  { %v65_v34 = vrot.slane %v64_v30, 4  ;;  %v298_v16 = vsel %vm94_vm10, 1.0, %v366_v0 }
  0x38   :  { %v227_v19 = vrot.slane %v298_v16, %v226_v14 }
  0x39   :  { %v66_v36 = vadd.f32 %v65_v34, %v64_v30  ;;  %v208_v30 = vld [vmem:[#allocation3] sm:$0xff] }
  0x3b   :  { %v67_v41 = vrot.slane %v66_v36, 2 }
  0x3d   :  { %v68_v44 = vadd.f32 %v67_v41, %v66_v36  ;;  %v209_v36 = vld [vmem:[#allocation3 + $0x8] sm:$0xff]  ;;  %v222_v41 = vld [vmem:[#allocation4] sm:$0xff] }
  0x3f   :  { %v69_v48 = vrot.slane %v68_v44, 1 }
  0x41   :  { %v70_v53 = vadd.f32 %v69_v48, %v68_v44 }
  0x43   :  { %309 = vrcp.f32 %v70_v53 }
  0x4d   :  { %v310_v8 = vpop.eup %309 }
  0x4e   :  { %v73_v15 = vsel %vm45_vm9, %v310_v8, 0.0 }
  0x4f   :  { %vm187_vm11 = vcmp.gt.f32.partialorder %v73_v15, %v141_v7  ;;  %vm189_vm12 = vcmp.le.f32.partialorder %v73_v15, %v143_v9  ;;  %vm188_vm13 = vcmp.gt.f32.partialorder %v73_v15, %v184_v10  ;;  %vm190_vm14 = vcmp.le.f32.partialorder %v73_v15, %v186_v12 }
  0x50   :  { %vm443_vm15 = vmand %vm187_vm11, %vm189_vm12 }
  0x51   :  { %v195_v13 = vsel %vm443_vm15, 1.0, %v366_v0  ;;  %vm450_vm2 = vmand %vm188_vm13, %vm190_vm14  ;;  %v210_v11 = vsel %vm443_vm15, %v73_v15, 0.0  ;;  %v228_v26 = vsel %vm443_vm15, %v227_v19, 0.0 }
  0x52   :  { %v197_v20 = vsel %vm46_vm1, %v195_v13, 0.0  ;;  %v196_v21 = vsel %vm450_vm2, 1.0, %v366_v0  ;;  %v212_v22 = vsel %vm46_vm1, %v210_v11, 0.0  ;;  %v211_v23 = vsel %vm450_vm2, %v73_v15, 0.0 }
  0x53   :  { %198 = vadd.xlane.f32.xlu0 %v197_v20  ;;  %213 = vadd.xlane.f32.xlu1 %v212_v22  ;;  %v200_v24 = vsel %vm46_vm1, %v196_v21, 0.0  ;;  %v215_v25 = vsel %vm46_vm1, %v211_v23, 0.0  ;;  %v229_v27 = vsel %vm450_vm2, %v227_v19, 0.0  ;;  %v230_v0 = vsel %vm46_vm1, %v228_v26, 0.0 }
  0x54   :  { %v233_v28 = vsel %vm46_vm1, %v229_v27, 0.0 }
  0x57   :  { %201 = vadd.xlane.f32.xlu0 %v200_v24  ;;  %216 = vadd.xlane.f32.xlu1 %v215_v25 }
  0x5b   :  { %231 = vadd.xlane.f32.xlu0 %v230_v0  ;;  %234 = vadd.xlane.f32.xlu1 %v233_v28 }
  0xe0   :  { %v199_v31 = vpop.xlane.xlu0 %198  ;;  %v214_v32 = vpop.xlane.xlu1 %213 }
  0xe1   :  { %v203_v33 = vadd.f32 %v199_v31, %v193_v29  ;;  %v218_v34 = vadd.f32 %v214_v32, %v208_v30 }
  0xe3   :  { %206 = vst.msk [vmem:[#allocation2] sm:$0xff] %vm30_vm0, %v203_v33  ;;  %220 = vst.msk [vmem:[#allocation3] sm:$0xff] %vm30_vm0, %v218_v34 }
  0xe4   :  { %v202_v37 = vpop.xlane.xlu0 %201  ;;  %v217_v38 = vpop.xlane.xlu1 %216 }
  0xe5   :  { %v204_v39 = vadd.f32 %v202_v37, %v194_v35  ;;  %v219_v40 = vadd.f32 %v217_v38, %v209_v36 }
  0xe7   :  { %207 = vst.msk [vmem:[#allocation2 + $0x8] sm:$0xff] %vm30_vm0, %v204_v39  ;;  %221 = vst.msk [vmem:[#allocation3 + $0x8] sm:$0xff] %vm30_vm0, %v219_v40 }
  0xe8   :  { %v232_v43 = vpop.xlane.xlu0 %231  ;;  %v235_v44 = vpop.xlane.xlu1 %234 }
  0xe9   :  { %v236_v45 = vadd.f32 %v232_v43, %v222_v41  ;;  %v237_v46 = vadd.f32 %v235_v44, %v223_v42 }
  0xea   :  { %v243_v47 = vld [vmem:[#allocation2] sm:$0xff]  ;;  %v245_v53 = vld [vmem:[#allocation3] sm:$0xff] }
  0xeb   :  { %238 = vst.msk [vmem:[#allocation4] sm:$0xff] %vm30_vm0, %v236_v45  ;;  %239 = vst.msk [vmem:[#allocation4 + $0x8] sm:$0xff] %vm30_vm0, %v237_v46  ;;  %v252_v48 = vmax.f32 %v243_v47, 1.0  ;;  %v250_v63 = vmul.f32 0.015625, %v243_v47  ;;  %vm268_vm1 = vcmp.gt.f32.partialorder %v243_v47, 0.0 }
  0xed   :  { %311 = vrcp.f32 %v252_v48 }
  0xee   :  { %v244_v49 = vld [vmem:[#allocation2 + $0x8] sm:$0xff]  ;;  %v246_v59 = vld [vmem:[#allocation3 + $0x8] sm:$0xff] }
  0xef   :  { %v253_v50 = vmax.f32 %v244_v49, 1.0  ;;  %v251_v5 = vmul.f32 0.015625, %v244_v49  ;;  %vm269_vm3 = vcmp.gt.f32.partialorder %v244_v49, 0.0 }
  0xf1   :  { %313 = vrcp.f32 %v253_v50 }
  0xf2   :  { %v247_v51 = vld [vmem:[#allocation4] sm:$0xff]  ;;  %v248_v56 = vld [vmem:[#allocation4 + $0x8] sm:$0xff] }
  0xf7   :  { %v312_v52 = vpop.eup %311 }
  0xf8   :  { %v255_v54 = vmul.f32 %v312_v52, %v245_v53  ;;  %v258_v55 = vmul.f32 %v312_v52, %v247_v51 }
  0xfa   :  { %v260_v57 = vsub.f32 %v258_v55, %v255_v54 }
  0xfb   :  { %v314_v58 = vpop.eup %313 }
  0xfc   :  { %v257_v60 = vmul.f32 %v314_v58, %v246_v59  ;;  %v259_v61 = vmul.f32 %v314_v58, %v248_v56  ;;  %v262_v62 = vmax.f32 %v260_v57, 0.0 }
  0xfe   :  { %v261_v1 = vsub.f32 %v259_v61, %v257_v60  ;;  %v264_v2 = vmul.f32 %v262_v62, %v255_v54 }
 0x100   :  { %v263_v3 = vmax.f32 %v261_v1, 0.0  ;;  %v266_v4 = vmul.f32 %v264_v2, %v250_v63 }
 0x102   :  { %v265_v6 = vmul.f32 %v263_v3, %v257_v60  ;;  %v270_v9 = vsel %vm268_vm1, %v266_v4, 0.0 }
 0x103   :  { %v272_v12 = vsel %vm30_vm0, %v270_v9, 0.0 }
 0x104   :  { %v267_v7 = vmul.f32 %v265_v6, %v251_v5 }
 0x106   :  { %v271_v10 = vsel %vm269_vm3, %v267_v7, 0.0 }
 0x107   :  { %v273_v8 = vsel %vm30_vm0, %v271_v10, 0.0 }
 0x108   :  { %v274_v14 = vadd.f32 %v273_v8, %v272_v12 }
 0x10a   :  { %v275_v15 = vrot.slane %v274_v14, 4 }
 0x10c   :  { %v276_v16 = vadd.f32 %v275_v15, %v274_v14 }
 0x10e   :  { %v277_v17 = vrot.slane %v276_v16, 2 }
 0x110   :  { %v278_v13 = vadd.f32 %v277_v17, %v276_v16 }
 0x112   :  { %v279_v18 = vrot.slane %v278_v13, 1 }
 0x114   :  { %v280_v11 = vadd.f32 %v279_v18, %v278_v13 }
 0x116   :  { %282 = vst.msk [vmem:[#allocation8] sm:$0x1] %vm281_vm4, %v280_v11 }
 0x117   :  { %348 = shalt.err (!%p345_p12)
}
 0x118   :  { %s349_s29 = scalar_lea.hbm %s493_s2, 16 }
 0x119   :  { %p350_p13 = scmp.ne.s32.totalorder %s493_s2, %s349_s29  ;;  %p353_p0 = scmp.lt.u32.totalorder %s349_s29, %s493_s2 }
 0x11b   :  { %p355_p1 = pnand %p353_p0, %p350_p13 }
 0x11d   :  { %358 = shalt.err (!%p355_p1)
}
 0x11e   :  { %292 = dma.vmem_to_hbm [thread:$0]  %s290_s24, 16, %s493_s2, [#allocation7]  }
 0x11f   :  { %361 = dma.done.wait [#allocation7], 16  }
 0x120   :  { %362 = vsyncadd [#allocation7], 4294967280 }
 0x121   :  { %296 = vsyncpa [#allocation6], 1 }
 0x122   :  { %297 = vsyncpa [#allocation7], 1 }

</bundles_post_ra>
